<compile_context>
chip_gen: v7x
topology: tpu7x:2x2x1
jax: 0.10.0
libtpu: 0.0.40
codegen_flags: <defaults>
</compile_context>

<pallas_src>
import functools

import jax
import jax.numpy as jnp
from jax import lax
from jax.experimental import pallas as pl
from jax.experimental.pallas import tpu as pltpu

LN_EPS = 1e-5                      # torch.nn.LayerNorm default
_INV_SQRT2 = 0.7071067811865476    # 1/sqrt(2) for exact (erf) GELU


def _prenorm_ff_kernel(x_ref, g_ref, b_ref, w1_ref, b1_ref, w2_ref, b2_ref,
                       o_ref, acc_ref, *, h_chunk, n_chunks):
    # ---- LayerNorm over last dim in f32 (biased variance, eps=1e-5, like torch) ----
    x = x_ref[...].astype(jnp.float32)                        # (TM, D)
    mean = jnp.mean(x, axis=-1, keepdims=True)                # (TM, 1)
    xc = x - mean
    var = jnp.mean(xc * xc, axis=-1, keepdims=True)           # (TM, 1)
    inv = lax.rsqrt(var + jnp.float32(LN_EPS))
    xn = xc * inv * g_ref[...] + b_ref[...]                   # (TM, D) f32

    # MXU inputs in bf16 (weights already bf16), accumulate in f32.
    xn_mxu = xn.astype(w1_ref.dtype)

    # ---- FeedForward: Linear -> GELU(exact) -> Linear, H processed in chunks ----
    acc_ref[...] = jnp.zeros_like(acc_ref)
    for c in range(n_chunks):                                 # static unroll, static slices
        s = c * h_chunk
        h = jnp.dot(xn_mxu, w1_ref[:, s:s + h_chunk],
                    preferred_element_type=jnp.float32) + b1_ref[:, s:s + h_chunk]
        h = 0.5 * h * (1.0 + lax.erf(h * jnp.float32(_INV_SQRT2)))   # exact GELU (f32, VPU)
        acc_ref[...] += jnp.dot(h.astype(w2_ref.dtype), w2_ref[s:s + h_chunk, :],
                                preferred_element_type=jnp.float32)

    o_ref[...] = (acc_ref[...] + b2_ref[...]).astype(o_ref.dtype)


def _choose_h_chunk(H):
    for c in (512, 256, 128, 64):
        if H % c == 0:
            return c
    return H


def _choose_tm(R, D, H, h_chunk, in_bytes, budget=36 * 1024 * 1024):
    r8 = ((R + 7) // 8) * 8
    for tm in (1024, 512, 256, 128, 64, 32, 16, 8):
        if tm > r8:
            continue
        est = (
            2 * tm * D * in_bytes          # x tile, double-buffered
            + 2 * tm * D * in_bytes        # out tile, double-buffered
            + 2 * 2 * (D * H + H * D)      # bf16 weights (conservatively counted x2)
            + tm * h_chunk * 4             # per-chunk f32 intermediate
            + 2 * tm * D * 4               # xn (f32) + acc scratch (f32)
        )
        if est <= budget:
            return tm
    return 8


def prenorm_feedforward(x, gamma, beta, w1, b1, w2, b2):
    """x: (B, N, D). Returns fn(LayerNorm(x)) with fn = Linear(D,H) -> GELU -> Linear(H,D)."""
    B, N, D = x.shape
    H = w1.shape[1]
    R = B * N

    h_chunk = _choose_h_chunk(H)
    n_chunks = H // h_chunk
    tm = _choose_tm(R, D, H, h_chunk, jnp.dtype(x.dtype).itemsize)

    # Pad rows up to a multiple of TM (padded rows are finite garbage, sliced off below).
    r_pad = ((R + tm - 1) // tm) * tm
    x2 = x.reshape(R, D)
    if r_pad > R:
        x2 = jnp.pad(x2, ((0, r_pad - R), (0, 0)))

    # Weights in bf16 for the MXU; LN/bias params stay f32 for the VPU.
    w1_b = w1.astype(jnp.bfloat16)
    w2_b = w2.astype(jnp.bfloat16)

    kernel = functools.partial(_prenorm_ff_kernel, h_chunk=h_chunk, n_chunks=n_chunks)

    out = pl.pallas_call(
        kernel,
        out_shape=jax.ShapeDtypeStruct((r_pad, D), x.dtype),
        grid_spec=pltpu.PrefetchScalarGridSpec(
            num_scalar_prefetch=0,
            grid=(r_pad // tm,),
            in_specs=[
                pl.BlockSpec((tm, D), lambda i: (i, 0)),   # x rows (pipelined)
                pl.BlockSpec((1, D), lambda i: (0, 0)),    # LN gamma (resident)
                pl.BlockSpec((1, D), lambda i: (0, 0)),    # LN beta  (resident)
                pl.BlockSpec((D, H), lambda i: (0, 0)),    # W1 bf16  (resident)
                pl.BlockSpec((1, H), lambda i: (0, 0)),    # b1       (resident)
                pl.BlockSpec((H, D), lambda i: (0, 0)),    # W2 bf16  (resident)
                pl.BlockSpec((1, D), lambda i: (0, 0)),    # b2       (resident)
            ],
            out_specs=pl.BlockSpec((tm, D), lambda i: (i, 0)),
            scratch_shapes=[pltpu.VMEM((tm, D), jnp.float32)],   # f32 accumulator
        ),
        compiler_params=pltpu.CompilerParams(
            dimension_semantics=("parallel",),          # shard rows across TCs on v7x
            vmem_limit_bytes=48 * 1024 * 1024,          # explicit, with headroom (< v7x 64 MiB)
        ),
    )(x2, gamma.reshape(1, D), beta.reshape(1, D),
      w1_b, b1.reshape(1, H), w2_b, b2.reshape(1, D))

    return out[:R].reshape(B, N, D)


def _reference(x, gamma, beta, w1, b1, w2, b2):
    # Matches the kernel's numerics: f32 LayerNorm/GELU, bf16 matmul inputs, f32 accumulation.
    xf = x.astype(jnp.float32)
    mean = jnp.mean(xf, axis=-1, keepdims=True)
    var = jnp.mean((xf - mean) ** 2, axis=-1, keepdims=True)
    xn = (xf - mean) / jnp.sqrt(var + LN_EPS) * gamma + beta
    h = jnp.dot(xn.astype(jnp.bfloat16), w1.astype(jnp.bfloat16),
                preferred_element_type=jnp.float32) + b1
    h = 0.5 * h * (1.0 + lax.erf(h * _INV_SQRT2))
    y = jnp.dot(h.astype(jnp.bfloat16), w2.astype(jnp.bfloat16),
                preferred_element_type=jnp.float32) + b2
    return y.astype(x.dtype)


if __name__ == "__main__":
    key = jax.random.PRNGKey(0)
    B, N, D, H = 2, 8, 32, 64  # small ViT-ish shapes: batch=2, tokens=8, dim=32, mlp hidden=64

    k = jax.random.split(key, 6)
    x = jax.random.normal(k[0], (B, N, D), dtype=jnp.float32)
    gamma = jnp.ones((D,), jnp.float32) + 0.01 * jax.random.normal(k[1], (D,), jnp.float32)
    beta = 0.01 * jax.random.normal(k[2], (D,), jnp.float32)
    w1 = jax.random.normal(k[3], (D, H), jnp.float32) * (1.0 / jnp.sqrt(D))
    b1 = 0.01 * jax.random.normal(k[4], (H,), jnp.float32)
    w2 = jax.random.normal(k[5], (H, D), jnp.float32) * (1.0 / jnp.sqrt(H))
    b2 = jnp.zeros((D,), jnp.float32)

    out = prenorm_feedforward(x, gamma, beta, w1, b1, w2, b2)
    out = jax.block_until_ready(out)

    ref = _reference(x, gamma, beta, w1, b1, w2, b2)
    assert out.shape == (B, N, D), out.shape
    err = float(jnp.max(jnp.abs(out - ref)))
    assert jnp.allclose(out, ref, atol=1e-2, rtol=1e-2), err  # bf16 MXU inputs -> looser tol

    print("KERNEL_OK")
</pallas_src>

<mosaic_0001>
module attributes {stable_mosaic.version = 11 : i64} {
  func.func @_prenorm_ff_kernel(%arg0: i32, %arg1: memref<16x32xf32, #tpu.memory_space<vmem>>, %arg2: memref<1x32xf32, #tpu.memory_space<vmem>>, %arg3: memref<1x32xf32, #tpu.memory_space<vmem>>, %arg4: memref<32x64xbf16, #tpu.memory_space<vmem>>, %arg5: memref<1x64xf32, #tpu.memory_space<vmem>>, %arg6: memref<64x32xbf16, #tpu.memory_space<vmem>>, %arg7: memref<1x32xf32, #tpu.memory_space<vmem>>, %arg8: memref<16x32xf32, #tpu.memory_space<vmem>>, %arg9: memref<16x32xf32, #tpu.memory_space<vmem>>) attributes {dimension_semantics = [#tpu.dimension_semantics<parallel>], iteration_bounds = array<i64: 1>, scalar_prefetch = 0 : i64, scratch_operands = 1 : i64, tpu.core_type = #tpu.core_type<tc>, window_params = [{transform_indices = @transform_0, window_bounds = array<i64: 16, 32>}, {pipeline_mode = #tpu.pipeline_mode<synchronous>, transform_indices = @transform_1, window_bounds = array<i64: 1, 32>}, {pipeline_mode = #tpu.pipeline_mode<synchronous>, transform_indices = @transform_2, window_bounds = array<i64: 1, 32>}, {pipeline_mode = #tpu.pipeline_mode<synchronous>, transform_indices = @transform_3, window_bounds = array<i64: 32, 64>}, {pipeline_mode = #tpu.pipeline_mode<synchronous>, transform_indices = @transform_4, window_bounds = array<i64: 1, 64>}, {pipeline_mode = #tpu.pipeline_mode<synchronous>, transform_indices = @transform_5, window_bounds = array<i64: 64, 32>}, {pipeline_mode = #tpu.pipeline_mode<synchronous>, transform_indices = @transform_6, window_bounds = array<i64: 1, 32>}, {transform_indices = @transform_7, window_bounds = array<i64: 16, 32>}]} {
    %c0 = arith.constant 0 : index
    %c0_0 = arith.constant 0 : index
    %0 = vector.load %arg1[%c0, %c0_0] : memref<16x32xf32, #tpu.memory_space<vmem>>, vector<16x32xf32>
    %cst = arith.constant dense<0.000000e+00> : vector<16xf32>
    %1 = vector.multi_reduction <add>, %0, %cst [1] : vector<16x32xf32> to vector<16xf32>
    %2 = vector.shape_cast %1 : vector<16xf32> to vector<16x1xf32>
    %cst_1 = arith.constant 3.200000e+01 : f32
    %3 = vector.broadcast %cst_1 : f32 to vector<16x1xf32>
    %4 = arith.divf %2, %3 : vector<16x1xf32>
    %5 = vector.broadcast %4 : vector<16x1xf32> to vector<16x32xf32>
    %6 = arith.subf %0, %5 : vector<16x32xf32>
    %7 = arith.mulf %6, %6 : vector<16x32xf32>
    %cst_2 = arith.constant dense<0.000000e+00> : vector<16xf32>
    %8 = vector.multi_reduction <add>, %7, %cst_2 [1] : vector<16x32xf32> to vector<16xf32>
    %9 = vector.shape_cast %8 : vector<16xf32> to vector<16x1xf32>
    %cst_3 = arith.constant 3.200000e+01 : f32
    %10 = vector.broadcast %cst_3 : f32 to vector<16x1xf32>
    %11 = arith.divf %9, %10 : vector<16x1xf32>
    %cst_4 = arith.constant 9.99999974E-6 : f32
    %12 = vector.broadcast %cst_4 : f32 to vector<16x1xf32>
    %13 = arith.addf %11, %12 : vector<16x1xf32>
    %14 = math.rsqrt %13 : vector<16x1xf32>
    %15 = vector.broadcast %14 : vector<16x1xf32> to vector<16x32xf32>
    %16 = arith.mulf %6, %15 : vector<16x32xf32>
    %c0_5 = arith.constant 0 : index
    %c0_6 = arith.constant 0 : index
    %17 = vector.load %arg2[%c0_5, %c0_6] : memref<1x32xf32, #tpu.memory_space<vmem>>, vector<1x32xf32>
    %18 = vector.broadcast %17 : vector<1x32xf32> to vector<16x32xf32>
    %19 = arith.mulf %16, %18 : vector<16x32xf32>
    %c0_7 = arith.constant 0 : index
    %c0_8 = arith.constant 0 : index
    %20 = vector.load %arg3[%c0_7, %c0_8] : memref<1x32xf32, #tpu.memory_space<vmem>>, vector<1x32xf32>
    %21 = vector.broadcast %20 : vector<1x32xf32> to vector<16x32xf32>
    %22 = arith.addf %19, %21 : vector<16x32xf32>
    %23 = arith.truncf %22 : vector<16x32xf32> to vector<16x32xbf16>
    %cst_9 = arith.constant 0.000000e+00 : f32
    %24 = vector.broadcast %cst_9 : f32 to vector<16x32xf32>
    %c0_10 = arith.constant 0 : index
    %c0_11 = arith.constant 0 : index
    %25 = vector.load %arg9[%c0_10, %c0_11] : memref<16x32xf32, #tpu.memory_space<vmem>>, vector<16x32xf32>
    tpu.vector_store %arg9[%c0_10, %c0_11], %24 {strides = array<i32>} : memref<16x32xf32, #tpu.memory_space<vmem>>, vector<16x32xf32>,
    %c0_12 = arith.constant 0 : index
    %c0_13 = arith.constant 0 : index
    %26 = vector.load %arg4[%c0_12, %c0_13] : memref<32x64xbf16, #tpu.memory_space<vmem>>, vector<32x64xbf16>
    %cst_14 = arith.constant dense<0.000000e+00> : vector<16x64xf32>
    %27 = tpu.matmul %23, %26, %cst_14 {dimension_numbers = #tpu.dot_dimension_numbers<[1], [0], [0], [1], [0, 0, 1, 1], [], []>} : vector<16x32xbf16>, vector<32x64xbf16>, vector<16x64xf32> -> vector<16x64xf32>
    %c0_15 = arith.constant 0 : index
    %c0_16 = arith.constant 0 : index
    %28 = vector.load %arg5[%c0_15, %c0_16] : memref<1x64xf32, #tpu.memory_space<vmem>>, vector<1x64xf32>
    %29 = vector.broadcast %28 : vector<1x64xf32> to vector<16x64xf32>
    %30 = arith.addf %27, %29 : vector<16x64xf32>
    %cst_17 = arith.constant 5.000000e-01 : f32
    %31 = vector.broadcast %cst_17 : f32 to vector<16x64xf32>
    %32 = arith.mulf %31, %30 : vector<16x64xf32>
    %cst_18 = arith.constant 0.707106769 : f32
    %33 = vector.broadcast %cst_18 : f32 to vector<16x64xf32>
    %34 = arith.mulf %30, %33 : vector<16x64xf32>
    %35 = math.erf %34 : vector<16x64xf32>
    %cst_19 = arith.constant 1.000000e+00 : f32
    %36 = vector.broadcast %cst_19 : f32 to vector<16x64xf32>
    %37 = arith.addf %36, %35 : vector<16x64xf32>
    %38 = arith.mulf %32, %37 : vector<16x64xf32>
    %c0_20 = arith.constant 0 : index
    %c0_21 = arith.constant 0 : index
    %39 = vector.load %arg9[%c0_20, %c0_21] : memref<16x32xf32, #tpu.memory_space<vmem>>, vector<16x32xf32>
    %40 = arith.truncf %38 : vector<16x64xf32> to vector<16x64xbf16>
    %c0_22 = arith.constant 0 : index
    %c0_23 = arith.constant 0 : index
    %41 = vector.load %arg6[%c0_22, %c0_23] : memref<64x32xbf16, #tpu.memory_space<vmem>>, vector<64x32xbf16>
    %cst_24 = arith.constant dense<0.000000e+00> : vector<16x32xf32>
    %42 = tpu.matmul %40, %41, %cst_24 {dimension_numbers = #tpu.dot_dimension_numbers<[1], [0], [0], [1], [0, 0, 1, 1], [], []>} : vector<16x64xbf16>, vector<64x32xbf16>, vector<16x32xf32> -> vector<16x32xf32>
    %43 = arith.addf %39, %42 : vector<16x32xf32>
    %c0_25 = arith.constant 0 : index
    %c0_26 = arith.constant 0 : index
    %44 = vector.load %arg9[%c0_25, %c0_26] : memref<16x32xf32, #tpu.memory_space<vmem>>, vector<16x32xf32>
    tpu.vector_store %arg9[%c0_25, %c0_26], %43 {strides = array<i32>} : memref<16x32xf32, #tpu.memory_space<vmem>>, vector<16x32xf32>,
    %c0_27 = arith.constant 0 : index
    %c0_28 = arith.constant 0 : index
    %45 = vector.load %arg9[%c0_27, %c0_28] : memref<16x32xf32, #tpu.memory_space<vmem>>, vector<16x32xf32>
    %c0_29 = arith.constant 0 : index
    %c0_30 = arith.constant 0 : index
    %46 = vector.load %arg7[%c0_29, %c0_30] : memref<1x32xf32, #tpu.memory_space<vmem>>, vector<1x32xf32>
    %47 = vector.broadcast %46 : vector<1x32xf32> to vector<16x32xf32>
    %48 = arith.addf %45, %47 : vector<16x32xf32>
    %c0_31 = arith.constant 0 : index
    %c0_32 = arith.constant 0 : index
    %49 = vector.load %arg8[%c0_31, %c0_32] : memref<16x32xf32, #tpu.memory_space<vmem>>, vector<16x32xf32>
    tpu.vector_store %arg8[%c0_31, %c0_32], %48 {strides = array<i32>} : memref<16x32xf32, #tpu.memory_space<vmem>>, vector<16x32xf32>,
    return
  }
  func.func @transform_0(%arg0: i32) -> (i32, i32) {
    %c0_i32 = arith.constant 0 : i32
    %c0_i32_0 = arith.constant 0 : i32
    return %arg0, %c0_i32 : i32, i32
  }
  func.func @transform_1(%arg0: i32) -> (i32, i32) {
    %c0_i32 = arith.constant 0 : i32
    %c0_i32_0 = arith.constant 0 : i32
    %c0_i32_1 = arith.constant 0 : i32
    return %c0_i32, %c0_i32_0 : i32, i32
  }
  func.func @transform_2(%arg0: i32) -> (i32, i32) {
    %c0_i32 = arith.constant 0 : i32
    %c0_i32_0 = arith.constant 0 : i32
    %c0_i32_1 = arith.constant 0 : i32
    return %c0_i32, %c0_i32_0 : i32, i32
  }
  func.func @transform_3(%arg0: i32) -> (i32, i32) {
    %c0_i32 = arith.constant 0 : i32
    %c0_i32_0 = arith.constant 0 : i32
    %c0_i32_1 = arith.constant 0 : i32
    return %c0_i32, %c0_i32_0 : i32, i32
  }
  func.func @transform_4(%arg0: i32) -> (i32, i32) {
    %c0_i32 = arith.constant 0 : i32
    %c0_i32_0 = arith.constant 0 : i32
    %c0_i32_1 = arith.constant 0 : i32
    return %c0_i32, %c0_i32_0 : i32, i32
  }
  func.func @transform_5(%arg0: i32) -> (i32, i32) {
    %c0_i32 = arith.constant 0 : i32
    %c0_i32_0 = arith.constant 0 : i32
    %c0_i32_1 = arith.constant 0 : i32
    return %c0_i32, %c0_i32_0 : i32, i32
  }
  func.func @transform_6(%arg0: i32) -> (i32, i32) {
    %c0_i32 = arith.constant 0 : i32
    %c0_i32_0 = arith.constant 0 : i32
    %c0_i32_1 = arith.constant 0 : i32
    return %c0_i32, %c0_i32_0 : i32, i32
  }
  func.func @transform_7(%arg0: i32) -> (i32, i32) {
    %c0_i32 = arith.constant 0 : i32
    %c0_i32_0 = arith.constant 0 : i32
    return %arg0, %c0_i32 : i32, i32
  }
}

</mosaic_0001>

<bundles_post_ra>
// kernel: tpu_custom_call.1
= control target key start
LH: loop header
LB: loop body
LE: loop exit
PB: predicated region body
PF: predicated region fallthrough
CT: control target
= control target key end

     0   :  { %vm30_vm0 = vcmask 261120   ;;  %s456_s0 = inlined_call_operand.vmem [shape: f32[16,32], index: 0, kind: input, shape index: {}]   ;;  %s457_s1 = inlined_call_operand.vmem [shape: f32[1,32], index: 1, kind: input, shape index: {}]   ;;  %s458_s2 = inlined_call_operand.vmem [shape: f32[1,32], index: 2, kind: input, shape index: {}]   ;;  %s459_s3 = inlined_call_operand.vmem [shape: bf16[32,64], index: 3, kind: input, shape index: {}]   ;;  %s460_s4 = inlined_call_operand.vmem [shape: f32[1,64], index: 4, kind: input, shape index: {}]   ;;  %s461_s5 = inlined_call_operand.vmem [shape: bf16[64,32], index: 5, kind: input, shape index: {}]   ;;  %s462_s6 = inlined_call_operand.vmem [shape: f32[1,32], index: 6, kind: input, shape index: {}]   ;;  %s463_s7 = inlined_call_operand.hbm [shape: f32[16,32], index: 7, kind: output, shape index: {}]  }
   0x1   :  { %v28_v0 = vld [vmem:[%s456_s0] sm:$0xff]  ;;  %v29_v1 = vld [vmem:[%s456_s0 + $0x8] sm:$0xff] }
   0x2   :  { %v31_v2 = vsel %vm30_vm0, %v28_v0, 0.0  ;;  %v34_v3 = vsel %vm30_vm0, %v29_v1, 0.0 }
   0x3   :  { %32 = vadd.xlane.f32.xlu0 %v31_v2 }
   0x4   :  { %12 = vsyncpa [#allocation4], 0  ;;  %v314_v14 = vld [vmem:[%s459_s3] sm:$0xff]   ;;  %v352_v15 = vmov 0.0   ;;  %v315_v16 = vld [vmem:[%s459_s3 + $0x8] sm:$0xff]   ;;  %vm353_vm1 = vmmov 0  }
   0x5   :  { %289 = vmatprep.subr.bf16.mxu0 %v352_v15  ;;  %77 = vst.msk [vmem:[#allocation2] sm:$0xff] %vm30_vm0, %v352_v15  ;;  %78 = vst.msk [vmem:[#allocation2 + $0x8] sm:$0xff] %vm30_vm0, %v352_v15  ;;  %297 = vmatprep.subr.bf16.mxu1 %v352_v15  ;;  %v269_v25 = vld [vmem:[%s457_s1] ss:$0 sm:$0xff]  ;;  %v317_v35 = vld [vmem:[%s461_s5 + $0x8] sm:$0xff]   ;;  %vm191_vm2 = vcmask 523264  }
   0x6   :  { %290 = vmatpush3.bf16.msra.mxu0 %v314_v14  ;;  %293 = vmatprep.mubr.msk.bf16.mxu0 %vm353_vm1, %v352_v15  ;;  %v270_v29 = vld [vmem:[%s458_s2] ss:$0 sm:$0xff]  ;;  %v318_v36 = vld [vmem:[%s461_s5 + $0x10] sm:$0xff]   ;;  %v319_v37 = vld [vmem:[%s461_s5 + $0x18] sm:$0xff]   ;;  %s354_s19 = smov [#allocation3]  }
   0x7   :  { %35 = vadd.xlane.f32.xlu0 %v34_v3  ;;  %291 = vmatprep.subr.bf16.mxu0 %v352_v15  ;;  %v316_v34 = vld [vmem:[%s461_s5] sm:$0xff]   ;;  %s258_s20 = sshll.u32 %s354_s19, 4  ;;  %s259_s20 = int_to_ptr.vmem [resolvable:$true] %s258_s20 }
   0x8   :  { %305 = vmatprep.mubr.msk.bf16.mxu1 %vm353_vm1, %v352_v15  ;;  %298 = vmatpush3.bf16.msra.mxu1 %v316_v34  ;;  %v271_v38 = vld [vmem:[%s460_s4] ss:$0 sm:$0xff]  ;;  %s328_s21 = scalar_lea.vmem %s259_s20, 256  ;;  %p333_p1 = scmp.lt.s32.totalorder %s259_s20, %s259_s20 }
   0x9   :  { %299 = vmatprep.subr.bf16.mxu1 %v352_v15  ;;  %p329_p0 = scmp.ne.s32.totalorder %s259_s20, %s328_s21  ;;  %p334_p2 = scmp.lt.s32.totalorder %s328_s21, %s328_s21 }
   0xa   :  { %292 = vmatpush3.bf16.msra.mxu0 %v315_v16 }
   0xb   :  { %p335_p3 = por %p334_p2, %p333_p1 }
   0xc   :  { %300 = vmatpush3.bf16.msra.mxu1 %v317_v35  ;;  %v156_v56 = vld [vmem:[#allocation2] sm:$0xff]  ;;  %v157_v58 = vld [vmem:[#allocation2 + $0x8] sm:$0xff] }
   0xd   :  { %301 = vmatprep.subr.bf16.mxu1 %v352_v15  ;;  %p336_p4 = pnand %p335_p3, %p329_p0 }
  0x10   :  { %302 = vmatpush3.bf16.msra.mxu1 %v318_v36 }
  0x11   :  { %303 = vmatprep.subr.bf16.mxu1 %v352_v15 }
  0x14   :  { %304 = vmatpush3.bf16.msra.mxu1 %v319_v37 }
  0x90   :  { %v33_v4 = vpop.xlane.xlu0 %32 }
  0x91   :  { %v38_v5 = vmul.f32 0.03125, %v33_v4 }
  0x93   :  { %v40_v6 = vsub.f32 %v28_v0, %v38_v5  ;;  %v280_v0 = vld [vmem:[%s462_s6] ss:$0 sm:$0xff] }
  0x94   :  { %v36_v7 = vpop.xlane.xlu0 %35 }
  0x95   :  { %v39_v8 = vmul.f32 0.03125, %v36_v7  ;;  %v42_v9 = vmul.f32 %v40_v6, %v40_v6 }
  0x97   :  { %v41_v10 = vsub.f32 %v29_v1, %v39_v8  ;;  %v44_v11 = vsel %vm30_vm0, %v42_v9, 0.0 }
  0x98   :  { %45 = vadd.xlane.f32.xlu1 %v44_v11 }
  0x99   :  { %v43_v12 = vmul.f32 %v41_v10, %v41_v10 }
  0x9b   :  { %v47_v13 = vsel %vm30_vm0, %v43_v12, 0.0 }
  0x9c   :  { %48 = vadd.xlane.f32.xlu1 %v47_v13 }
 0x125   :  { %v46_v17 = vpop.xlane.xlu1 %45 }
 0x126   :  { %v50_v18 = vmul.f32 0.03125, %v46_v17 }
 0x128   :  { %v52_v19 = vadd.f32 1e-05, %v50_v18 }
 0x129   :  { %v49_v20 = vpop.xlane.xlu1 %48 }
 0x12a   :  { %320 = vrsqrt.f32 %v52_v19  ;;  %v51_v21 = vmul.f32 0.03125, %v49_v20 }
 0x12c   :  { %v53_v22 = vadd.f32 1e-05, %v51_v21 }
 0x12e   :  { %322 = vrsqrt.f32 %v53_v22 }
 0x134   :  { %v321_v23 = vpop.eup %320 }
 0x135   :  { %v56_v24 = vmul.f32 %v321_v23, %v40_v6 }
 0x137   :  { %v65_v28 = vmul.f32 %v269_v25, %v56_v24 }
 0x138   :  { %v323_v26 = vpop.eup %322 }
 0x139   :  { %v57_v27 = vmul.f32 %v323_v26, %v41_v10  ;;  %v74_v31 = vadd.f32 %v270_v29, %v65_v28 }
 0x13b   :  { %v66_v30 = vmul.f32 %v269_v25, %v57_v27 }
 0x13d   :  { %v75_v32 = vadd.f32 %v270_v29, %v66_v30 }
 0x13f   :  { %v76_v33 = vpack.c.bf16 %v75_v32, %v74_v31 }
 0x141   :  { %294 = vmatmul.mubr.msk.bf16.vlgmr.msra.gmra.mrb[0].mxu0 %vm30_vm0, %v76_v33 }
 0x214   :  { %v139_v39 = vpop.f32.mrb[0].mxu0 }
 0x215   :  { %v140_v40 = vadd.f32 %v271_v38, %v139_v39  ;;  %v295_v41 = vpop.f32.mrb[1].mxu0 }
 0x216   :  { %v142_v42 = vpop.f32.mrb[2].mxu0 }
 0x217   :  { %v148_v43 = vmul.f32 0.70710677, %v140_v40  ;;  %v143_v44 = vadd.f32 %v271_v38, %v142_v42  ;;  %v296_v45 = vpop.f32.mrb[3].mxu0  ;;  %v146_v50 = vmul.f32 0.5, %v140_v40 }
 0x219   :  { %324 = verf.f32 %v148_v43  ;;  %v149_v46 = vmul.f32 0.70710677, %v143_v44  ;;  %v147_v51 = vmul.f32 0.5, %v143_v44 }
 0x21b   :  { %326 = verf.f32 %v149_v46 }
 0x223   :  { %v325_v47 = vpop.eup %324 }
 0x224   :  { %v152_v48 = vadd.f32 1.0, %v325_v47 }
 0x225   :  { %v327_v49 = vpop.eup %326 }
 0x226   :  { %v153_v52 = vadd.f32 1.0, %v327_v49  ;;  %v154_v53 = vmul.f32 %v152_v48, %v146_v50 }
 0x228   :  { %v155_v54 = vmul.f32 %v153_v52, %v147_v51 }
 0x22a   :  { %v158_v55 = vpack.c.bf16 %v155_v54, %v154_v53 }
 0x22c   :  { %306 = vmatmul.mubr.msk.bf16.vlgmr.msra.gmra.mrb[0].mxu1 %vm191_vm2, %v158_v55 }
 0x2ff   :  { %v229_v57 = vpop.f32.mrb[0].mxu1 }
 0x300   :  { %v236_v59 = vadd.f32 %v229_v57, %v156_v56  ;;  %v307_v60 = vpop.f32.mrb[1].mxu1 }
 0x301   :  { %v232_v61 = vpop.f32.mrb[2].mxu1 }
 0x302   :  { %238 = vst.msk [vmem:[#allocation2] sm:$0xff] %vm30_vm0, %v236_v59  ;;  %v237_v62 = vadd.f32 %v232_v61, %v157_v58  ;;  %v308_v63 = vpop.f32.mrb[3].mxu1 }
 0x304   :  { %239 = vst.msk [vmem:[#allocation2 + $0x8] sm:$0xff] %vm30_vm0, %v237_v62 }
 0x309   :  { %v240_v1 = vld [vmem:[#allocation2] sm:$0xff] }
 0x30a   :  { %v249_v2 = vadd.f32 %v280_v0, %v240_v1 }
 0x30b   :  { %v241_v3 = vld [vmem:[#allocation2 + $0x8] sm:$0xff] }
 0x30c   :  { %v250_v4 = vadd.f32 %v280_v0, %v241_v3  ;;  %251 = vst.msk [vmem:[#allocation3] sm:$0xff] %vm30_vm0, %v249_v2 }
 0x30e   :  { %252 = vst.msk [vmem:[#allocation3 + $0x8] sm:$0xff] %vm30_vm0, %v250_v4 }
 0x30f   :  { %339 = shalt.err (!%p336_p4)
}
 0x310   :  { %s340_s23 = scalar_lea.hbm %s463_s7, 256 }
 0x311   :  { %p341_p5 = scmp.ne.s32.totalorder %s463_s7, %s340_s23  ;;  %p344_p6 = scmp.lt.u32.totalorder %s340_s23, %s463_s7 }
 0x313   :  { %p346_p7 = pnand %p344_p6, %p341_p5 }
 0x315   :  { %349 = shalt.err (!%p346_p7)
}
 0x316   :  { %s355_s0 = smov 128   ;;  %s356_s28 = smov 8  }
 0x317   :  { %264 = dma.vmem_to_hbm [thread:$0]  %s259_s20, 256, %s463_s7, [#allocation4], %s355_s0, %s355_s0, %s356_s28  }
 0x318   :  { %350 = dma.done.wait [#allocation4], 256  }
 0x319   :  { %351 = vsyncadd [#allocation4], 4294967040 }
 0x31a   :  { %268 = vsyncpa [#allocation4], 1 }

</bundles_post_ra>
